<compile_context>
chip_gen: v7x
topology: tpu7x:2x2x1
jax: 0.10.0
libtpu: 0.0.40
codegen_flags: <defaults>
</compile_context>

<pallas_src>
import functools

import jax
import jax.numpy as jnp
from jax import lax
from jax.experimental import pallas as pl
from jax.experimental.pallas import tpu as pltpu


def _round_up(v, m):
    return (v + m - 1) // m * m


def _vmem_budget_bytes():
    """Generation-aware VMEM budget (v5e/v6e: 128 MiB phys, v7x: 64 MiB per TC)."""
    cap = 128 * 1024 * 1024
    try:
        info = pltpu.get_tpu_info()
        cap = int(getattr(info, "vmem_capacity_bytes", cap)) or cap
    except Exception:
        pass
    # Never claim the whole physical VMEM: leave headroom for compiler scratch,
    # semaphores and the double buffers the pipeline emitter adds.
    return min(cap * 3 // 4, 100 * 1024 * 1024)


def _divisors_from(dim, candidates):
    return [c for c in candidates if c <= dim and dim % c == 0]


# -----------------------------------------------------------------------------
# Wrapped nn.Linear: y = x @ W.T + b     (weight layout [O, H], K-tiled over H)
# -----------------------------------------------------------------------------

def _linear_kernel(x_ref, w_ref, b_ref, y_ref, acc_ref, *, cast_inputs):
    k = pl.program_id(2)

    @pl.when(k == 0)
    def _():
        acc_ref[...] = jnp.zeros_like(acc_ref)

    xb = x_ref[...]
    wb = w_ref[...]
    if cast_inputs:  # only for dtypes the MXU can't take natively (e.g. fp16)
        xb = xb.astype(jnp.float32)
        wb = wb.astype(jnp.float32)
    # Contract hidden dim of x against hidden dim of W directly (no in-kernel
    # transpose, no full-weight cast); MXU accumulates in f32.
    acc_ref[...] += lax.dot_general(
        xb, wb,
        dimension_numbers=(((1,), (1,)), ((), ())),
        preferred_element_type=jnp.float32)

    @pl.when(k == pl.num_programs(2) - 1)
    def _():
        y_ref[...] = (acc_ref[...] + b_ref[...].astype(jnp.float32)).astype(y_ref.dtype)


# -----------------------------------------------------------------------------
# XTX statistics: raw sum  S = X^T @ X   (alpha/beta combine done outside)
# -----------------------------------------------------------------------------

def _xtx_kernel(x_ref, acc_ref, *, th, cast_inputs):
    hj = pl.program_id(0)   # column-stripe axis (parallel)
    i = pl.program_id(1)    # token-tile axis (reduction, last)

    @pl.when(i == 0)
    def _():
        acc_ref[...] = jnp.zeros_like(acc_ref)

    x_full = x_ref[...]
    # Column stripe is sliced from the already-resident full-row block: no
    # second HBM stream and no extra double buffer for a duplicated input.
    if th % 128 == 0:
        col = pl.multiple_of(hj * th, 128)
    else:
        col = hj * th
    x_col = x_ref[:, pl.ds(col, th)]
    if cast_inputs:
        x_full = x_full.astype(jnp.float32)
        x_col = x_col.astype(jnp.float32)
    # bf16 x bf16 -> f32 is MXU-native; no f32 pre-cast of the (tm, H) tile.
    # TODO(synk): confirm the ((0,),(0,)) contraction lowers without a vxpose of
    # the (tm, H) block (check bundle dump); restructure the operand feed if so.
    # TODO(synk): exploit XTX symmetry (compute only upper-triangle blocks) for
    # MXU-bound cases / extremely large H (2-D output tiling).
    acc_ref[...] += lax.dot_general(
        x_full, x_col,
        dimension_numbers=(((0,), (0,)), ((), ())),
        preferred_element_type=jnp.float32)


# -----------------------------------------------------------------------------
# Wrapper
# -----------------------------------------------------------------------------

def layer_wrapper_forward(x, weight, bias, xtx_old, nsamples):
    """Mirrors _LayerWrapperThatAccumulatesXTX.forward for a wrapped nn.Linear.

    Returns (y, xtx_new, nsamples_new).
    """
    B, S, H = x.shape
    O = weight.shape[0]
    M = B * S
    dt = x.dtype
    itemsize = x.dtype.itemsize
    cast_inputs = x.dtype not in (jnp.float32, jnp.bfloat16)

    budget = _vmem_budget_bytes()

    # ---- padding (minimal; skipped entirely in the common aligned case) ------
    O_pad = _round_up(O, 128)
    # Hidden dim: only pad when it is both large and not 128-aligned (small H
    # can use full-dim blocks legally; large aligned H needs no copy).
    H_pad = H if (H % 128 == 0 or H <= 512) else _round_up(H, 128)
    # Tokens: pad only up to a sublane multiple when needed (tiny tail).
    M_pad = M if M % 8 == 0 else _round_up(M, 8)

    x_flat = x.reshape(M, H)
    if M_pad != M or H_pad != H:
        # TODO(synk): replace tail-row padding with an in-kernel row mask to
        # avoid this activation copy for ragged token counts.
        x_flat = jnp.pad(x_flat, ((0, M_pad - M), (0, H_pad - H)))
    w_pad = weight
    if O_pad != O or H_pad != H:
        # In a real calibration loop this pad is hoisted out of the per-batch call.
        w_pad = jnp.pad(weight, ((0, O_pad - O), (0, H_pad - H)))
    b_pad = bias if O_pad == O else jnp.pad(bias, ((0, O_pad - O),))
    b_pad = b_pad.reshape(1, O_pad)

    # ---- VMEM-budget-aware tile selection ------------------------------------
    tm_cands = _divisors_from(M_pad, (1024, 512, 256, 128, 64, 32, 16, 8)) or [M_pad]
    tn_cands = _divisors_from(O_pad, (512, 256, 128)) or [O_pad]
    th_cands = _divisors_from(H_pad, (1024, 512, 256, 128)) or [H_pad]
    tk_cands = [H_pad] + _divisors_from(H_pad, (4096, 2048, 1024, 512, 256, 128))

    # XTX: a large column stripe th cuts X re-reads (traffic ~ (H/th)*M*H), then
    # the largest token tile that keeps the blocks inside the budget.
    tm_x, th = tm_cands[-1], th_cands[-1]
    found = False
    for th_c in th_cands:
        for tm_c in tm_cands:
            need = 2 * tm_c * H_pad * itemsize + 2 * H_pad * th_c * 4
            if need <= budget * 3 // 4:
                tm_x, th, found = tm_c, th_c, True
                break
        if found:
            break

    # Linear: large tm/tn cut HBM re-streaming; tk = H when it fits so the
    # resident operand is read exactly once, otherwise K-tiled accumulation.
    tm_l, tn, tk = tm_cands[-1], tn_cands[-1], tk_cands[-1]
    found = False
    for tm_c in tm_cands:
        for tn_c in tn_cands:
            for tk_c in tk_cands:
                need = (2 * (tm_c + tn_c) * tk_c * itemsize   # double-buffered x / W
                        + 2 * tm_c * tn_c * itemsize          # double-buffered y
                        + tm_c * tn_c * 4                     # f32 accumulator scratch
                        + 2 * tn_c * itemsize)                # bias stripe
                if need <= budget * 4 // 5:
                    tm_l, tn, tk, found = tm_c, tn_c, tk_c, True
                    break
            if found:
                break
        if found:
            break

    nm, no, nk = M_pad // tm_l, O_pad // tn, H_pad // tk

    # Grid order: keep the cheaper-to-re-stream operand on the inner parallel
    # axis so the other stays resident (re-fetch is skipped when the block
    # index is unchanged between consecutive grid steps).
    traffic_tokens_outer = M_pad * H_pad + nm * O_pad * H_pad   # W re-read per token tile
    traffic_out_outer = O_pad * H_pad + no * M_pad * H_pad      # X re-read per output stripe
    tokens_outer = traffic_tokens_outer <= traffic_out_outer

    if tokens_outer:
        grid_l = (nm, no, nk)
        x_map = lambda i, j, k: (i, k)
        w_map = lambda i, j, k: (j, k)
        b_map = lambda i, j, k: (0, j)
        y_map = lambda i, j, k: (i, j)
    else:
        grid_l = (no, nm, nk)
        x_map = lambda j, i, k: (i, k)
        w_map = lambda j, i, k: (j, k)
        b_map = lambda j, i, k: (0, j)
        y_map = lambda j, i, k: (i, j)

    # ---- wrapped linear layer -------------------------------------------------
    y_pad = pl.pallas_call(
        functools.partial(_linear_kernel, cast_inputs=cast_inputs),
        grid_spec=pltpu.PrefetchScalarGridSpec(
            num_scalar_prefetch=0,
            grid=grid_l,
            in_specs=[
                pl.BlockSpec((tm_l, tk), x_map),   # activation tile
                pl.BlockSpec((tn, tk), w_map),     # weight stripe
                pl.BlockSpec((1, tn), b_map),      # bias stripe
            ],
            out_specs=pl.BlockSpec((tm_l, tn), y_map),
            scratch_shapes=[pltpu.VMEM((tm_l, tn), jnp.float32)],
        ),
        out_shape=jax.ShapeDtypeStruct((M_pad, O_pad), dt),
        compiler_params=pltpu.CompilerParams(
            dimension_semantics=("parallel", "parallel", "arbitrary"),
            vmem_limit_bytes=budget),
    )(x_flat, w_pad, b_pad)

    # ---- running XTX statistics (raw sum; combine done outside) ---------------
    xtx_sum = pl.pallas_call(
        functools.partial(_xtx_kernel, th=th, cast_inputs=cast_inputs),
        grid_spec=pltpu.PrefetchScalarGridSpec(
            num_scalar_prefetch=0,
            grid=(H_pad // th, M_pad // tm_x),   # (column stripe, token reduction)
            in_specs=[pl.BlockSpec((tm_x, H_pad), lambda hj, i: (i, 0))],
            out_specs=pl.BlockSpec((H_pad, th), lambda hj, i: (0, hj)),
        ),
        out_shape=jax.ShapeDtypeStruct((H_pad, H_pad), jnp.float32),
        compiler_params=pltpu.CompilerParams(
            dimension_semantics=("parallel", "arbitrary"),
            vmem_limit_bytes=budget),
    )(x_flat)

    # AQEngine.add_batch combine (trivial XLA op).
    # NOTE: tmp = input.shape[0] (leading batch dim of the 3-D calibration
    # input), matching the PyTorch `inp.shape[0]` semantics.
    tmp = B
    n_new = nsamples + tmp
    alpha = jnp.float32(nsamples) / jnp.float32(n_new)
    beta = jnp.float32(1.0) / jnp.float32(n_new)
    xtx_new = xtx_old.astype(jnp.float32) * alpha + beta * xtx_sum[:H, :H]

    y = y_pad[:M, :O].reshape(B, S, O)
    return y, xtx_new, n_new


if __name__ == "__main__":
    # Small deterministic setup consistent with the module's forward.
    B, S, H, O = 2, 8, 32, 64

    key = jax.random.PRNGKey(0)
    kx, kw, kb = jax.random.split(key, 3)
    x = jax.random.normal(kx, (B, S, H), dtype=jnp.float32)
    weight = jax.random.normal(kw, (O, H), dtype=jnp.float32) * 0.05
    bias = jax.random.normal(kb, (O,), dtype=jnp.float32) * 0.1

    # Fresh AQEngine state: XTX = zeros, nsamples = 0.
    xtx_old = jnp.zeros((H, H), dtype=jnp.float32)
    nsamples = 0

    y, xtx_new, n_new = layer_wrapper_forward(x, weight, bias, xtx_old, nsamples)
    jax.block_until_ready((y, xtx_new))

    # Pure-JAX reference for correctness.
    x_flat = x.reshape(-1, H).astype(jnp.float32)
    tmp = B
    alpha = nsamples / (nsamples + tmp)
    beta = 1.0 / (nsamples + tmp)
    xtx_ref = xtx_old * alpha + beta * (x_flat.T @ x_flat)
    y_ref = (x_flat @ weight.T + bias).reshape(B, S, O)

    assert jnp.allclose(y, y_ref, atol=1e-4, rtol=1e-4), "linear output mismatch"
    assert jnp.allclose(xtx_new, xtx_ref, atol=1e-4, rtol=1e-4), "XTX mismatch"
    assert n_new == nsamples + tmp

    print("KERNEL_OK")
</pallas_src>

<mosaic_0001>
module attributes {stable_mosaic.version = 11 : i64} {
  func.func @_linear_kernel(%arg0: i32, %arg1: i32, %arg2: i32, %arg3: memref<16x32xf32, #tpu.memory_space<vmem>>, %arg4: memref<128x32xf32, #tpu.memory_space<vmem>>, %arg5: memref<1x128xf32, #tpu.memory_space<vmem>>, %arg6: memref<16x128xf32, #tpu.memory_space<vmem>>, %arg7: memref<16x128xf32, #tpu.memory_space<vmem>>) attributes {dimension_semantics = [#tpu.dimension_semantics<parallel>, #tpu.dimension_semantics<parallel>, #tpu.dimension_semantics<arbitrary>], iteration_bounds = array<i64: 1, 1, 1>, scalar_prefetch = 0 : i64, scratch_operands = 1 : i64, tpu.core_type = #tpu.core_type<tc>, window_params = [{transform_indices = @transform_0, window_bounds = array<i64: 16, 32>}, {transform_indices = @transform_1, window_bounds = array<i64: 128, 32>}, {transform_indices = @transform_2, window_bounds = array<i64: 1, 128>}, {transform_indices = @transform_3, window_bounds = array<i64: 16, 128>}]} {
    %c0_i32 = arith.constant 0 : i32
    %0 = arith.cmpi eq, %arg2, %c0_i32 : i32
    %1 = arith.extui %0 : i1 to i32
    %c0_i32_0 = arith.constant 0 : i32
    %2 = arith.cmpi ne, %1, %c0_i32_0 : i32
    scf.if %2 {
      %cst_10 = arith.constant 0.000000e+00 : f32
      %12 = vector.broadcast %cst_10 : f32 to vector<16x128xf32>
      %c0_11 = arith.constant 0 : index
      %c0_12 = arith.constant 0 : index
      %13 = vector.load %arg7[%c0_11, %c0_12] : memref<16x128xf32, #tpu.memory_space<vmem>>, vector<16x128xf32>
      tpu.vector_store %arg7[%c0_11, %c0_12], %12 {strides = array<i32>} : memref<16x128xf32, #tpu.memory_space<vmem>>, vector<16x128xf32>,
    } else {
    }
    %c0 = arith.constant 0 : index
    %c0_1 = arith.constant 0 : index
    %3 = vector.load %arg3[%c0, %c0_1] : memref<16x32xf32, #tpu.memory_space<vmem>>, vector<16x32xf32>
    %c0_2 = arith.constant 0 : index
    %c0_3 = arith.constant 0 : index
    %4 = vector.load %arg4[%c0_2, %c0_3] : memref<128x32xf32, #tpu.memory_space<vmem>>, vector<128x32xf32>
    %c0_4 = arith.constant 0 : index
    %c0_5 = arith.constant 0 : index
    %5 = vector.load %arg7[%c0_4, %c0_5] : memref<16x128xf32, #tpu.memory_space<vmem>>, vector<16x128xf32>
    %cst = arith.constant dense<0.000000e+00> : vector<16x128xf32>
    %6 = tpu.matmul %3, %4, %cst {dimension_numbers = #tpu.dot_dimension_numbers<[1], [1], [0], [0], [0, 0, 1, 0], [], []>} : vector<16x32xf32>, vector<128x32xf32>, vector<16x128xf32> -> vector<16x128xf32>
    %7 = arith.addf %5, %6 : vector<16x128xf32>
    %c0_6 = arith.constant 0 : index
    %c0_7 = arith.constant 0 : index
    %8 = vector.load %arg7[%c0_6, %c0_7] : memref<16x128xf32, #tpu.memory_space<vmem>>, vector<16x128xf32>
    tpu.vector_store %arg7[%c0_6, %c0_7], %7 {strides = array<i32>} : memref<16x128xf32, #tpu.memory_space<vmem>>, vector<16x128xf32>,
    %c0_i32_8 = arith.constant 0 : i32
    %9 = arith.cmpi eq, %arg2, %c0_i32_8 : i32
    %10 = arith.extui %9 : i1 to i32
    %c0_i32_9 = arith.constant 0 : i32
    %11 = arith.cmpi ne, %10, %c0_i32_9 : i32
    scf.if %11 {
      %c0_10 = arith.constant 0 : index
      %c0_11 = arith.constant 0 : index
      %12 = vector.load %arg7[%c0_10, %c0_11] : memref<16x128xf32, #tpu.memory_space<vmem>>, vector<16x128xf32>
      %c0_12 = arith.constant 0 : index
      %c0_13 = arith.constant 0 : index
      %13 = vector.load %arg5[%c0_12, %c0_13] : memref<1x128xf32, #tpu.memory_space<vmem>>, vector<1x128xf32>
      %14 = vector.broadcast %13 : vector<1x128xf32> to vector<16x128xf32>
      %15 = arith.addf %12, %14 : vector<16x128xf32>
      %c0_14 = arith.constant 0 : index
      %c0_15 = arith.constant 0 : index
      %16 = vector.load %arg6[%c0_14, %c0_15] : memref<16x128xf32, #tpu.memory_space<vmem>>, vector<16x128xf32>
      tpu.vector_store %arg6[%c0_14, %c0_15], %15 {strides = array<i32>} : memref<16x128xf32, #tpu.memory_space<vmem>>, vector<16x128xf32>,
    } else {
    }
    return
  }
  func.func @transform_0(%arg0: i32, %arg1: i32, %arg2: i32) -> (i32, i32) {
    %c0_i32 = arith.constant 0 : i32
    return %arg0, %arg2 : i32, i32
  }
  func.func @transform_1(%arg0: i32, %arg1: i32, %arg2: i32) -> (i32, i32) {
    %c0_i32 = arith.constant 0 : i32
    return %arg1, %arg2 : i32, i32
  }
  func.func @transform_2(%arg0: i32, %arg1: i32, %arg2: i32) -> (i32, i32) {
    %c0_i32 = arith.constant 0 : i32
    %c0_i32_0 = arith.constant 0 : i32
    return %c0_i32, %arg1 : i32, i32
  }
  func.func @transform_3(%arg0: i32, %arg1: i32, %arg2: i32) -> (i32, i32) {
    %c0_i32 = arith.constant 0 : i32
    return %arg0, %arg1 : i32, i32
  }
}

</mosaic_0001>

<bundles_post_ra>
// kernel: tpu_custom_call.1
= control target key start
LH: loop header
LB: loop body
LE: loop exit
PB: predicated region body
PF: predicated region fallthrough
CT: control target
= control target key end

     0   :  { %8 = vsyncpa [#allocation4], 0  ;;  %s598_s0 = inlined_call_operand.hbm [shape: f32[16,32], index: 0, kind: input, shape index: {}]   ;;  %s599_s1 = inlined_call_operand.hbm [shape: f32[128,32], index: 1, kind: input, shape index: {}]   ;;  %s600_s2 = inlined_call_operand.hbm [shape: f32[1,128], index: 2, kind: input, shape index: {}]   ;;  %s601_s3 = inlined_call_operand.hbm [shape: f32[16,128], index: 3, kind: output, shape index: {}]  }
   0x1   :  { %9 = vsyncpa [#allocation7], 0 }
   0x2   :  { %10 = vsyncpa [#allocation5], 0  ;;  %s468_s12 = smov [#allocation6]   ;;  %s469_s14 = smov [#allocation3]  }
   0x3   :  { %s28_s13 = sshll.u32 %s468_s12, 4  ;;  %s16_s15 = sshll.u32 %s469_s14, 4  ;;  %s29_s13 = int_to_ptr.vmem [resolvable:$true] %s28_s13  ;;  %s494_s15 = int_to_ptr.vmem [resolvable:$true] %s16_s15 }
   0x4   :  { %s374_s18 = scalar_lea.hbm %s599_s1, 2048 }
   0x5   :  { %p375_p0 = scmp.ne.s32.totalorder %s599_s1, %s374_s18  ;;  %p378_p1 = scmp.lt.u32.totalorder %s374_s18, %s599_s1 }
   0x7   :  { %p380_p2 = pnand %p378_p1, %p375_p0 }
   0x9   :  { %383 = shalt.err (!%p380_p2)
}
   0xa   :  { %s384_s23 = scalar_lea.vmem %s29_s13, 2048  ;;  %p389_p4 = scmp.lt.s32.totalorder %s29_s13, %s29_s13 }
   0xb   :  { %p385_p3 = scmp.ne.s32.totalorder %s29_s13, %s384_s23  ;;  %p390_p5 = scmp.lt.s32.totalorder %s384_s23, %s384_s23 }
   0xd   :  { %p391_p6 = por %p390_p5, %p389_p4 }
   0xf   :  { %p392_p7 = pnand %p391_p6, %p385_p3 }
  0x11   :  { %395 = shalt.err (!%p392_p7)
}
  0x12   :  { %s470_s24 = smov 128   ;;  %s471_s25 = smov 8  }
  0x13   :  { %34 = dma.hbm_to_vmem [thread:$0]  %s599_s1, 2048, %s29_s13, [#allocation7], %s470_s24, %s470_s24, %s471_s25  }
  0x14   :  { %s396_s30 = scalar_lea.hbm %s598_s0, 256 }
  0x15   :  { %p397_p8 = scmp.ne.s32.totalorder %s598_s0, %s396_s30  ;;  %p400_p9 = scmp.lt.u32.totalorder %s396_s30, %s598_s0 }
  0x17   :  { %p402_p10 = pnand %p400_p9, %p397_p8 }
  0x19   :  { %405 = shalt.err (!%p402_p10)
}
  0x1a   :  { %s406_s8 = scalar_lea.vmem %s494_s15, 256  ;;  %p411_p12 = scmp.lt.s32.totalorder %s494_s15, %s494_s15 }
  0x1b   :  { %p407_p11 = scmp.ne.s32.totalorder %s494_s15, %s406_s8  ;;  %p412_p13 = scmp.lt.s32.totalorder %s406_s8, %s406_s8 }
  0x1d   :  { %p413_p0 = por %p412_p13, %p411_p12 }
  0x1f   :  { %p414_p1 = pnand %p413_p0, %p407_p11 }
  0x21   :  { %417 = shalt.err (!%p414_p1)
}
  0x22   :  { %22 = dma.hbm_to_vmem [thread:$0]  %s598_s0, 256, %s494_s15, [#allocation4], %s470_s24, %s470_s24, %s471_s25  }
  0x23   :  { %s472_s10 = smov [#allocation8]   ;;  %s418_s14 = scalar_lea.hbm %s600_s2, 16 }
  0x24   :  { %s41_s11 = sshll.u32 %s472_s10, 4  ;;  %p419_p2 = scmp.ne.s32.totalorder %s600_s2, %s418_s14  ;;  %s42_s11 = int_to_ptr.vmem [resolvable:$true] %s41_s11 }
  0x25   :  { %p422_p3 = scmp.lt.u32.totalorder %s418_s14, %s600_s2 }
  0x27   :  { %p424_p4 = pnand %p422_p3, %p419_p2 }
  0x29   :  { %427 = shalt.err (!%p424_p4)
}
  0x2a   :  { %s428_s20 = scalar_lea.vmem %s42_s11, 16  ;;  %s432_s0 = scalar_lea.vmem %s42_s11, 32 }
  0x2b   :  { %p429_p5 = scmp.ne.s32.totalorder %s42_s11, %s428_s20  ;;  %p433_p6 = scmp.lt.s32.totalorder %s42_s11, %s42_s11 }
  0x2c   :  { %p434_p7 = scmp.lt.s32.totalorder %s432_s0, %s428_s20 }
  0x2e   :  { %p435_p8 = por %p434_p7, %p433_p6 }
  0x30   :  { %p436_p9 = pnand %p435_p8, %p429_p5 }
  0x32   :  { %439 = shalt.err (!%p436_p9)
}
  0x33   :  { %44 = dma.hbm_to_vmem [thread:$0]  %s600_s2, 16, %s42_s11, [#allocation7]  }
  0x34   :  { %462 = dma.done.wait [#allocation4], 256  }
  0x35   :  { %463 = vsyncadd [#allocation4], 4294967040 }
  0x36   :  { %464 = dma.done.wait [#allocation7], 2064  }
  0x37   :  { %465 = vsyncadd [#allocation7], 4294965232  ;;  %vm80_vm0 = vcmask 261120   ;;  %v62_v1 = vld [vmem:[#allocation6] sm:$0xff]  ;;  %v63_v2 = vld [vmem:[#allocation6 + $0x8] sm:$0xff]  ;;  %s473_s2 = smov [#allocation9]  }
  0x38   :  { %vm545_vm1 = vmpackc.low %vm80_vm0, %vm80_vm0  ;;  %v64_v3 = vld [vmem:[#allocation6 + $0x10] sm:$0xff]  ;;  %v320_v4 = vpack.c.bf16 %v63_v2, %v62_v1  ;;  %v65_v5 = vld [vmem:[#allocation6 + $0x18] sm:$0xff]  ;;  %s235_s22 = sshll.u32 %s473_s2, 4  ;;  %s236_s22 = int_to_ptr.vmem [resolvable:$true] %s235_s22 }
  0x39   :  { %v326_v6 = vpack.c.bf16 %v65_v5, %v64_v3  ;;  %v60_v7 = vld [vmem:[#allocation3] sm:$0xff]  ;;  %v66_v8 = vld [vmem:[#allocation6 + $0x20] sm:$0xff]  ;;  %v67_v9 = vld [vmem:[#allocation6 + $0x28] sm:$0xff]  ;;  %s440_s23 = scalar_lea.vmem %s236_s22, 256  ;;  %p445_p11 = scmp.lt.s32.totalorder %s236_s22, %s236_s22 }
  0x3a   :  { %322 = vmatprep.subr.msk.bf16.mxu0 %vm545_vm1, %v320_v4  ;;  %317 = vmatprep.mubr.msk.f32.mxu0 %vm80_vm0, %v60_v7  ;;  %v332_v10 = vpack.c.bf16 %v67_v9, %v66_v8  ;;  %v68_v11 = vld [vmem:[#allocation6 + $0x30] sm:$0xff]  ;;  %v69_v12 = vld [vmem:[#allocation6 + $0x38] sm:$0xff]  ;;  %v70_v14 = vld [vmem:[#allocation6 + $0x40] sm:$0xff]  ;;  %p441_p10 = scmp.ne.s32.totalorder %s236_s22, %s440_s23  ;;  %p446_p12 = scmp.lt.s32.totalorder %s440_s23, %s440_s23 }
  0x3b   :  { %325 = vmatpush3.bf16.xpose.msk.msra.mxu0 %vm545_vm1, %v320_v4  ;;  %v338_v13 = vpack.c.bf16 %v69_v12, %v68_v11  ;;  %v71_v15 = vld [vmem:[#allocation6 + $0x48] sm:$0xff]  ;;  %v72_v17 = vld [vmem:[#allocation6 + $0x50] sm:$0xff]  ;;  %v73_v18 = vld [vmem:[#allocation6 + $0x58] sm:$0xff] }
  0x3c   :  { %328 = vmatprep.subr.msk.bf16.mxu0 %vm545_vm1, %v326_v6  ;;  %v344_v16 = vpack.c.bf16 %v71_v15, %v70_v14  ;;  %v350_v19 = vpack.c.bf16 %v73_v18, %v72_v17  ;;  %v74_v20 = vld [vmem:[#allocation6 + $0x60] sm:$0xff]  ;;  %v75_v21 = vld [vmem:[#allocation6 + $0x68] sm:$0xff]  ;;  %v76_v23 = vld [vmem:[#allocation6 + $0x70] sm:$0xff]  ;;  %p447_p13 = por %p446_p12, %p445_p11 }
  0x3d   :  { %v356_v22 = vpack.c.bf16 %v75_v21, %v74_v20  ;;  %v77_v24 = vld [vmem:[#allocation6 + $0x78] sm:$0xff]  ;;  %v266_v27 = vld [vmem:[#allocation8] ss:$0 sm:$0xff] }
  0x3e   :  { %v362_v25 = vpack.c.bf16 %v77_v24, %v76_v23  ;;  %v61_v26 = vld [vmem:[#allocation3 + $0x8] sm:$0xff]  ;;  %p448_p0 = pnand %p447_p13, %p441_p10 }
  0x43   :  { %331 = vmatpush3.bf16.xpose.msk.msra.mxu0 %vm545_vm1, %v326_v6 }
  0x44   :  { %334 = vmatprep.subr.msk.bf16.mxu0 %vm545_vm1, %v332_v10 }
  0x4b   :  { %337 = vmatpush3.bf16.xpose.msk.msra.mxu0 %vm545_vm1, %v332_v10 }
  0x4c   :  { %340 = vmatprep.subr.msk.bf16.mxu0 %vm545_vm1, %v338_v13 }
  0x53   :  { %343 = vmatpush3.bf16.xpose.msk.msra.mxu0 %vm545_vm1, %v338_v13 }
  0x54   :  { %346 = vmatprep.subr.msk.bf16.mxu0 %vm545_vm1, %v344_v16 }
  0x5b   :  { %349 = vmatpush3.bf16.xpose.msk.msra.mxu0 %vm545_vm1, %v344_v16 }
  0x5c   :  { %352 = vmatprep.subr.msk.bf16.mxu0 %vm545_vm1, %v350_v19 }
  0x63   :  { %355 = vmatpush3.bf16.xpose.msk.msra.mxu0 %vm545_vm1, %v350_v19 }
  0x64   :  { %358 = vmatprep.subr.msk.bf16.mxu0 %vm545_vm1, %v356_v22 }
  0x6b   :  { %361 = vmatpush3.bf16.xpose.msk.msra.mxu0 %vm545_vm1, %v356_v22 }
  0x6c   :  { %364 = vmatprep.subr.msk.bf16.mxu0 %vm545_vm1, %v362_v25 }
  0x73   :  { %367 = vmatpush3.bf16.xpose.msk.msra.mxu0 %vm545_vm1, %v362_v25 }
  0x7a   :  { %318 = vmatmul.mubr.msk.f32.vlgmr.msra.gmra.mrb[0].mxu0 %vm80_vm0, %v61_v26 }
 0x14d   :  { %v319_v28 = vpop.f32.mrb[0].mxu0 }
 0x14e   :  { %v227_v29 = vadd.f32 %v319_v28, %v266_v27  ;;  %v201_v30 = vpop.f32.mrb[1].mxu0 }
 0x14f   :  { %v226_v31 = vadd.f32 %v266_v27, %v201_v30 }
 0x150   :  { %229 = vst [vmem:[#allocation9 + $0x8] sm:$0xff] %v227_v29 }
 0x151   :  { %228 = vst [vmem:[#allocation9] sm:$0xff] %v226_v31 }
 0x152   :  { %451 = shalt.err (!%p448_p0)
}
 0x153   :  { %s452_s28 = scalar_lea.hbm %s601_s3, 256 }
 0x154   :  { %p453_p1 = scmp.ne.s32.totalorder %s601_s3, %s452_s28  ;;  %p456_p2 = scmp.lt.u32.totalorder %s452_s28, %s601_s3 }
 0x156   :  { %p458_p3 = pnand %p456_p2, %p453_p1 }
 0x158   :  { %461 = shalt.err (!%p458_p3)
}
 0x159   :  { %241 = dma.vmem_to_hbm [thread:$0]  %s236_s22, 256, %s601_s3, [#allocation5], %s470_s24, %s470_s24, %s471_s25  }
 0x15a   :  { %466 = dma.done.wait [#allocation5], 256  }
 0x15b   :  { %467 = vsyncadd [#allocation5], 4294967040 }
 0x15c   :  { %245 = vsyncpa [#allocation4], 1 }
 0x15d   :  { %246 = vsyncpa [#allocation7], 1 }
 0x15e   :  { %247 = vsyncpa [#allocation5], 1 }

</bundles_post_ra>
